<compile_context>
chip_gen: v6e
topology: v6e:2x2x1
jax: 0.10.0
libtpu: 0.0.40
codegen_flags: <defaults>
</compile_context>

<pallas_src>
import jax
import jax.numpy as jnp
from jax.experimental import pallas as pl
from jax.experimental.pallas import tpu as pltpu

M_PLUS = 0.9
M_MINUS = 0.1
LOSS_LAMBDA = 0.5
RECON_LOSS_SCALE = 0.0005


def _caps_loss_kernel(inputs_ref, labels_ref, img_ref, recon_ref, out_ref):
    step = pl.program_id(0)

    # --- reconstruction SSE for this tile (cast to f32 on the VPU) ---
    diff = recon_ref[...].astype(jnp.float32) - img_ref[...].astype(jnp.float32)
    tile_sse = jnp.sum(diff * diff)

    @pl.when(step == 0)
    def _():
        # --- margin loss (Eq. 4), computed once on the first grid step ---
        v = inputs_ref[...].astype(jnp.float32)
        t = labels_ref[...].astype(jnp.float32)
        pos = jnp.maximum(M_PLUS - v, 0.0)
        neg = jnp.maximum(v - M_MINUS, 0.0)
        margin = jnp.sum(t * pos * pos + LOSS_LAMBDA * (1.0 - t) * neg * neg)
        out_ref[0, 0] = margin + RECON_LOSS_SCALE * tile_sse

    @pl.when(step > 0)
    def _():
        out_ref[0, 0] = out_ref[0, 0] + RECON_LOSS_SCALE * tile_sse


def _pick_tile_d(B, D, itemsize, max_tile_bytes):
    """Largest multiple of 128 that divides D with B*TD*itemsize <= budget."""
    if D % 128 != 0:
        return D  # fall back to a single full-width block (block == full dim is legal)
    n128 = D // 128
    best = 128
    for m in range(1, n128 + 1):
        if n128 % m == 0:
            td = 128 * m
            if B * td * itemsize <= max_tile_bytes:
                best = td
    return best


def capsule_loss(inputs, labels, images, reconstructions, *, max_tile_bytes=4 << 20):
    B, K = inputs.shape
    # reshape only (no dtype cast in the wrapper -> no extra HBM copy for bf16/f16 inputs)
    img_flat = images.reshape(B, -1)
    recon_flat = reconstructions.reshape(B, -1)
    D = img_flat.shape[1]

    img_itemsize = jnp.dtype(img_flat.dtype).itemsize
    TD = _pick_tile_d(B, D, img_itemsize, max_tile_bytes)
    num_tiles = D // TD if D % TD == 0 else pl.cdiv(D, TD)

    # VMEM budget: 2 streamed inputs x 2 pipeline buffers x tile, plus the tiny
    # (B, K) margin-loss blocks and headroom.  Stays far below v7x's 64 MiB.
    blk_bytes = B * TD * img_itemsize
    small_bytes = B * K * (jnp.dtype(inputs.dtype).itemsize
                           + jnp.dtype(labels.dtype).itemsize)
    vmem_limit = int(max(4 * blk_bytes + 4 * small_bytes + (2 << 20), 4 << 20))

    cost = pl.CostEstimate(
        flops=int(6 * B * D + 10 * B * K),
        transcendentals=0,
        bytes_accessed=int(2 * B * D * img_itemsize + 2 * B * K * 4 + 4),
    )

    out = pl.pallas_call(
        _caps_loss_kernel,
        out_shape=jax.ShapeDtypeStruct((1, 1), jnp.float32),
        grid=(num_tiles,),
        in_specs=[
            pl.BlockSpec((B, K), lambda d: (0, 0)),    # capsule magnitudes (tiny, resident)
            pl.BlockSpec((B, K), lambda d: (0, 0)),    # one-hot labels (tiny, resident)
            pl.BlockSpec((B, TD), lambda d: (0, d)),   # images, streamed tile-by-tile
            pl.BlockSpec((B, TD), lambda d: (0, d)),   # reconstructions, streamed
        ],
        # Scalar accumulator lives in SMEM for the whole grid; written to HBM once.
        out_specs=pl.BlockSpec(memory_space=pltpu.MemorySpace.SMEM),
        compiler_params=pltpu.CompilerParams(
            dimension_semantics=("arbitrary",),
            vmem_limit_bytes=vmem_limit,
        ),
        cost_estimate=cost,
    )(inputs, labels, img_flat, recon_flat)
    # TODO(synk): add a leading "parallel" grid axis with per-core partial sums so both
    # v7x TensorCores stream independent halves (single-TC on v5e/v6e makes it moot here).
    return out[0, 0]


def capsule_loss_ref(inputs, labels, images, reconstructions):
    """Plain-JAX reference matching the PyTorch module (size_average=False)."""
    inputs = inputs.astype(jnp.float32)
    labels = labels.astype(jnp.float32)
    l_k = labels * jnp.maximum(M_PLUS - inputs, 0.0) ** 2 + \
        LOSS_LAMBDA * (1.0 - labels) * jnp.maximum(inputs - M_MINUS, 0.0) ** 2
    margin = jnp.sum(jnp.sum(l_k, axis=1))
    recon = jnp.sum((reconstructions.astype(jnp.float32) - images.astype(jnp.float32)) ** 2)
    return margin + RECON_LOSS_SCALE * recon


if __name__ == "__main__":
    key = jax.random.PRNGKey(0)
    k1, k2, k3, k4 = jax.random.split(key, 4)

    B, NUM_CLASSES = 2, 10
    C, H, W = 4, 16, 16

    # capsule magnitudes in [0, 1]
    inputs = jax.random.uniform(k1, (B, NUM_CLASSES), dtype=jnp.float32)
    # one-hot labels
    cls = jax.random.randint(k2, (B,), 0, NUM_CLASSES)
    labels = jax.nn.one_hot(cls, NUM_CLASSES, dtype=jnp.float32)
    images = jax.random.uniform(k3, (B, C, H, W), dtype=jnp.float32)
    reconstructions = jax.random.uniform(k4, (B, C, H, W), dtype=jnp.float32)

    ref = capsule_loss_ref(inputs, labels, images, reconstructions)

    # default tiling (single tile for these small shapes)
    loss = capsule_loss(inputs, labels, images, reconstructions)
    loss = jax.block_until_ready(loss)
    assert jnp.allclose(loss, ref, rtol=1e-5, atol=1e-5), (loss, ref)

    # force a small tile budget to exercise the multi-tile accumulation path (4 tiles)
    loss_tiled = capsule_loss(inputs, labels, images, reconstructions,
                              max_tile_bytes=B * 256 * 4)
    loss_tiled = jax.block_until_ready(loss_tiled)
    assert jnp.allclose(loss_tiled, ref, rtol=1e-5, atol=1e-5), (loss_tiled, ref)

    print("KERNEL_OK")
</pallas_src>

<mosaic_0001>
module attributes {stable_mosaic.version = 11 : i64} {
  func.func @_caps_loss_kernel(%arg0: i32, %arg1: memref<2x10xf32, #tpu.memory_space<vmem>>, %arg2: memref<2x10xf32, #tpu.memory_space<vmem>>, %arg3: memref<2x1024xf32, #tpu.memory_space<vmem>>, %arg4: memref<2x1024xf32, #tpu.memory_space<vmem>>, %arg5: memref<1x1xf32, #tpu.memory_space<smem>>) attributes {dimension_semantics = [#tpu.dimension_semantics<arbitrary>], iteration_bounds = array<i64: 1>, scalar_prefetch = 0 : i64, scratch_operands = 0 : i64, tpu.core_type = #tpu.core_type<tc>, window_params = [{pipeline_mode = #tpu.pipeline_mode<synchronous>, transform_indices = @transform_0, window_bounds = array<i64: 2, 10>}, {pipeline_mode = #tpu.pipeline_mode<synchronous>, transform_indices = @transform_1, window_bounds = array<i64: 2, 10>}, {transform_indices = @transform_2, window_bounds = array<i64: 2, 1024>}, {transform_indices = @transform_3, window_bounds = array<i64: 2, 1024>}, {transform_indices = @transform_4, window_bounds = array<i64: 1, 1>}]} {
    %c0 = arith.constant 0 : index
    %c0_0 = arith.constant 0 : index
    %0 = vector.load %arg4[%c0, %c0_0] : memref<2x1024xf32, #tpu.memory_space<vmem>>, vector<2x1024xf32>
    %c0_1 = arith.constant 0 : index
    %c0_2 = arith.constant 0 : index
    %1 = vector.load %arg3[%c0_1, %c0_2] : memref<2x1024xf32, #tpu.memory_space<vmem>>, vector<2x1024xf32>
    %2 = arith.subf %0, %1 : vector<2x1024xf32>
    %3 = arith.mulf %2, %2 : vector<2x1024xf32>
    %4 = vector.shape_cast %3 : vector<2x1024xf32> to vector<1x2x1024xf32>
    %cst = arith.constant dense<0.000000e+00> : vector<1xf32>
    %5 = vector.multi_reduction <add>, %4, %cst [1, 2] : vector<1x2x1024xf32> to vector<1xf32>
    %6 = vector.shape_cast %5 : vector<1xf32> to vector<1x1x1xf32>
    %7 = vector.extract %6[0, 0, 0] : f32 from vector<1x1x1xf32>
    %c0_i32 = arith.constant 0 : i32
    %8 = arith.cmpi eq, %arg0, %c0_i32 : i32
    %9 = arith.extui %8 : i1 to i32
    %c0_i32_3 = arith.constant 0 : i32
    %10 = arith.cmpi ne, %9, %c0_i32_3 : i32
    scf.if %10 {
      %c0_6 = arith.constant 0 : index
      %c0_7 = arith.constant 0 : index
      %14 = vector.load %arg1[%c0_6, %c0_7] : memref<2x10xf32, #tpu.memory_space<vmem>>, vector<2x10xf32>
      %c0_8 = arith.constant 0 : index
      %c0_9 = arith.constant 0 : index
      %15 = vector.load %arg2[%c0_8, %c0_9] : memref<2x10xf32, #tpu.memory_space<vmem>>, vector<2x10xf32>
      %cst_10 = arith.constant 0.899999976 : f32
      %16 = vector.broadcast %cst_10 : f32 to vector<2x10xf32>
      %17 = arith.subf %16, %14 : vector<2x10xf32>
      %cst_11 = arith.constant 0.000000e+00 : f32
      %18 = vector.broadcast %cst_11 : f32 to vector<2x10xf32>
      %19 = arith.maximumf %17, %18 : vector<2x10xf32>
      %cst_12 = arith.constant 1.000000e-01 : f32
      %20 = vector.broadcast %cst_12 : f32 to vector<2x10xf32>
      %21 = arith.subf %14, %20 : vector<2x10xf32>
      %cst_13 = arith.constant 0.000000e+00 : f32
      %22 = vector.broadcast %cst_13 : f32 to vector<2x10xf32>
      %23 = arith.maximumf %21, %22 : vector<2x10xf32>
      %24 = arith.mulf %15, %19 : vector<2x10xf32>
      %25 = arith.mulf %24, %19 : vector<2x10xf32>
      %cst_14 = arith.constant 1.000000e+00 : f32
      %26 = vector.broadcast %cst_14 : f32 to vector<2x10xf32>
      %27 = arith.subf %26, %15 : vector<2x10xf32>
      %cst_15 = arith.constant 5.000000e-01 : f32
      %28 = vector.broadcast %cst_15 : f32 to vector<2x10xf32>
      %29 = arith.mulf %28, %27 : vector<2x10xf32>
      %30 = arith.mulf %29, %23 : vector<2x10xf32>
      %31 = arith.mulf %30, %23 : vector<2x10xf32>
      %32 = arith.addf %25, %31 : vector<2x10xf32>
      %33 = vector.shape_cast %32 : vector<2x10xf32> to vector<1x2x10xf32>
      %cst_16 = arith.constant dense<0.000000e+00> : vector<1xf32>
      %34 = vector.multi_reduction <add>, %33, %cst_16 [1, 2] : vector<1x2x10xf32> to vector<1xf32>
      %35 = vector.shape_cast %34 : vector<1xf32> to vector<1x1x1xf32>
      %36 = vector.extract %35[0, 0, 0] : f32 from vector<1x1x1xf32>
      %cst_17 = arith.constant 5.000000e-04 : f32
      %37 = arith.mulf %cst_17, %7 : f32
      %38 = arith.addf %36, %37 : f32
      %c0_18 = arith.constant 0 : index
      %c0_19 = arith.constant 0 : index
      %39 = memref.load %arg5[%c0_18, %c0_19] : memref<1x1xf32, #tpu.memory_space<smem>>
      memref.store %38, %arg5[%c0_18, %c0_19] : memref<1x1xf32, #tpu.memory_space<smem>>
    } else {
    }
    %c0_i32_4 = arith.constant 0 : i32
    %11 = arith.cmpi sgt, %arg0, %c0_i32_4 : i32
    %12 = arith.extui %11 : i1 to i32
    %c0_i32_5 = arith.constant 0 : i32
    %13 = arith.cmpi ne, %12, %c0_i32_5 : i32
    scf.if %13 {
      %c0_6 = arith.constant 0 : index
      %c0_7 = arith.constant 0 : index
      %14 = memref.load %arg5[%c0_6, %c0_7] : memref<1x1xf32, #tpu.memory_space<smem>>
      %cst_8 = arith.constant 5.000000e-04 : f32
      %15 = arith.mulf %cst_8, %7 : f32
      %16 = arith.addf %14, %15 : f32
      %c0_9 = arith.constant 0 : index
      %c0_10 = arith.constant 0 : index
      %17 = memref.load %arg5[%c0_9, %c0_10] : memref<1x1xf32, #tpu.memory_space<smem>>
      memref.store %16, %arg5[%c0_9, %c0_10] : memref<1x1xf32, #tpu.memory_space<smem>>
    } else {
    }
    return
  }
  func.func @transform_0(%arg0: i32) -> (i32, i32) {
    %c0_i32 = arith.constant 0 : i32
    %c0_i32_0 = arith.constant 0 : i32
    %c0_i32_1 = arith.constant 0 : i32
    return %c0_i32, %c0_i32_0 : i32, i32
  }
  func.func @transform_1(%arg0: i32) -> (i32, i32) {
    %c0_i32 = arith.constant 0 : i32
    %c0_i32_0 = arith.constant 0 : i32
    %c0_i32_1 = arith.constant 0 : i32
    return %c0_i32, %c0_i32_0 : i32, i32
  }
  func.func @transform_2(%arg0: i32) -> (i32, i32) {
    %c0_i32 = arith.constant 0 : i32
    %c0_i32_0 = arith.constant 0 : i32
    return %c0_i32, %arg0 : i32, i32
  }
  func.func @transform_3(%arg0: i32) -> (i32, i32) {
    %c0_i32 = arith.constant 0 : i32
    %c0_i32_0 = arith.constant 0 : i32
    return %c0_i32, %arg0 : i32, i32
  }
  func.func @transform_4(%arg0: i32) -> (i32, i32) {
    %c0_i32 = arith.constant 0 : i32
    %c0_i32_0 = arith.constant 0 : i32
    %c0_i32_1 = arith.constant 0 : i32
    return %c0_i32, %c0_i32_0 : i32, i32
  }
}

</mosaic_0001>

<bundles_post_ra>
// kernel: tpu_custom_call.1
= control target key start
LH: loop header
LB: loop body
LE: loop exit
PB: predicated region body
PF: predicated region fallthrough
CT: control target
= control target key end

     0   :  { %9 = vsyncpa [#allocation3], 0  ;;  %s360_s0 = inlined_call_operand.hbm [shape: f32[2,10], index: 0, kind: input, shape index: {}]   ;;  %s361_s1 = inlined_call_operand.hbm [shape: f32[2,10], index: 1, kind: input, shape index: {}]   ;;  %s362_s2 = inlined_call_operand.hbm [shape: f32[2,1024], index: 2, kind: input, shape index: {}]   ;;  %s363_s3 = inlined_call_operand.hbm [shape: f32[2,1024], index: 3, kind: input, shape index: {}]   ;;  %s364_s4 = inlined_call_operand.hbm [shape: f32[1,1], index: 4, kind: output, shape index: {}]  }
   0x1   :  { %10 = vsyncpa [#allocation6], 0 }
   0x2   :  { %11 = vsyncpa [#allocation9], 0 }
   0x3   :  { %12 = vsyncpa [#allocation4], 0  ;;  %s306_s15 = smov [#allocation5]   ;;  %s307_s17 = smov [#allocation2]  }
   0x4   :  { %s29_s16 = sshll.u32 %s306_s15, 4  ;;  %s19_s18 = sshll.u32 %s307_s17, 4  ;;  %s30_s16 = int_to_ptr.vmem [resolvable:$true] %s29_s16  ;;  %s20_s18 = int_to_ptr.vmem [resolvable:$true] %s19_s18 }
   0x5   :  { %s218_s19 = scalar_lea.vmem %s30_s16, 32  ;;  %p223_p1 = scmp.lt.s32.totalorder %s30_s16, %s30_s16 }
   0x6   :  { %p219_p0 = scmp.ne.s32.totalorder %s30_s16, %s218_s19  ;;  %p224_p2 = scmp.lt.s32.totalorder %s218_s19, %s218_s19 }
   0x8   :  { %p225_p3 = por %p224_p2, %p223_p1 }
   0xa   :  { %p226_p4 = pnand %p225_p3, %p219_p0 }
   0xc   :  { %229 = shalt.err (!%p226_p4)
}
   0xd   :  { %32 = dma.hbm_to_vmem [thread:$0]  %s361_s1, 32, %s30_s16, [#allocation6]  }
   0xe   :  { %s238_s22 = scalar_lea.vmem %s20_s18, 32  ;;  %p243_p6 = scmp.lt.s32.totalorder %s20_s18, %s20_s18 }
   0xf   :  { %p239_p5 = scmp.ne.s32.totalorder %s20_s18, %s238_s22  ;;  %p244_p7 = scmp.lt.s32.totalorder %s238_s22, %s238_s22 }
  0x11   :  { %p245_p8 = por %p244_p7, %p243_p6 }
  0x13   :  { %p246_p9 = pnand %p245_p8, %p239_p5 }
  0x15   :  { %249 = shalt.err (!%p246_p9)
}
  0x16   :  { %22 = dma.hbm_to_vmem [thread:$0]  %s360_s0, 32, %s20_s18, [#allocation3]  }
  0x17   :  { %s308_s25 = smov [#allocation7]   ;;  %s309_s27 = smov [#allocation8]  }
  0x18   :  { %s39_s26 = sshll.u32 %s308_s25, 4  ;;  %s49_s28 = sshll.u32 %s309_s27, 4  ;;  %s40_s26 = int_to_ptr.vmem [resolvable:$true] %s39_s26  ;;  %s50_s28 = int_to_ptr.vmem [resolvable:$true] %s49_s28 }
  0x19   :  { %s258_s29 = scalar_lea.vmem %s40_s26, 256  ;;  %p263_p11 = scmp.lt.s32.totalorder %s40_s26, %s40_s26 }
  0x1a   :  { %p259_p10 = scmp.ne.s32.totalorder %s40_s26, %s258_s29  ;;  %p264_p12 = scmp.lt.s32.totalorder %s258_s29, %s258_s29 }
  0x1c   :  { %p265_p13 = por %p264_p12, %p263_p11 }
  0x1e   :  { %p266_p0 = pnand %p265_p13, %p259_p10 }
  0x20   :  { %269 = shalt.err (!%p266_p0)
}
  0x21   :  { %42 = dma.hbm_to_vmem [thread:$0]  %s362_s2, 256, %s40_s26, [#allocation6]  }
  0x22   :  { %s278_s5 = scalar_lea.vmem %s50_s28, 256  ;;  %p283_p2 = scmp.lt.s32.totalorder %s50_s28, %s50_s28 }
  0x23   :  { %p279_p1 = scmp.ne.s32.totalorder %s50_s28, %s278_s5  ;;  %p284_p3 = scmp.lt.s32.totalorder %s278_s5, %s278_s5 }
  0x25   :  { %p285_p4 = por %p284_p3, %p283_p2 }
  0x27   :  { %p286_p5 = pnand %p285_p4, %p279_p1 }
  0x29   :  { %289 = shalt.err (!%p286_p5)
}
  0x2a   :  { %52 = dma.hbm_to_vmem [thread:$0]  %s363_s3, 256, %s50_s28, [#allocation9]  }
  0x2b   :  { %298 = dma.done.wait [#allocation3], 32  }
  0x2c   :  { %299 = vsyncadd [#allocation3], 4294967264 }
  0x2d   :  { %300 = dma.done.wait [#allocation6], 288  }
  0x2e   :  { %301 = vsyncadd [#allocation6], 4294967008 }
  0x2f   :  { %302 = dma.done.wait [#allocation9], 256  }
  0x30   :  { %303 = vsyncadd [#allocation9], 4294967040  ;;  %v79_v0 = vlaneseq  ;;  %v310_v1 = vmov 1983009808   ;;  %v65_v5 = vld [vmem:[#allocation8] sm:$0xff]  ;;  %v66_v6 = vld [vmem:[#allocation8 + $0x8] sm:$0xff] }
  0x31   :  { %v77_v2 = vunpack.c.l.s4 %v310_v1  ;;  %v67_v7 = vld [vmem:[#allocation7] sm:$0xff]  ;;  %v68_v8 = vld [vmem:[#allocation7 + $0x8] sm:$0xff]  ;;  %v146_v11 = vld [vmem:[#allocation2] sm:$0x3]  ;;  %vm117_vm0 = vcmask 1041408   ;;  %vm159_vm1 = vcmask 74752  }
  0x32   :  { %v80_v4 = vshrl.u32 %v79_v0, 7  ;;  %v69_v9 = vsub.f32 %v65_v5, %v67_v7  ;;  %v70_v12 = vsub.f32 %v66_v6, %v68_v8  ;;  %v147_v13 = vld [vmem:[#allocation5] sm:$0x3]  ;;  %v148_v16 = vsub.f32 0.9, %v146_v11  ;;  %s311_s9 = smov [#allocation10]  }
  0x33   :  { %v78_v3 = vunpack.c.0.s8 %v77_v2  ;;  %v199_v17 = vadd.f32 -0.1, %v146_v11  ;;  %v154_v20 = vsub.f32 1.0, %v147_v13 }
  0x34   :  { %v71_v14 = vmul.f32 %v69_v9, %v69_v9  ;;  %v72_v15 = vmul.f32 %v70_v12, %v70_v12  ;;  %v149_v26 = vmax.f32 %v148_v16, 0.0 }
  0x35   :  { %v81_v10 = vsub.s32 %v78_v3, %v80_v4  ;;  %v151_v27 = vmax.f32 %v199_v17, 0.0  ;;  %v155_v31 = vmul.f32 0.5, %v154_v20 }
  0x36   :  { %v75_v18 = vcombine.high %v71_v14, %v71_v14  ;;  %v92_v21 = vcombine.high %v72_v15, %v72_v15  ;;  %v152_v38 = vmul.f32 %v149_v26, %v147_v13 }
  0x37   :  { %v82_v19 = vrot.slane %v71_v14, %v81_v10  ;;  %v99_v24 = vrot.slane %v72_v15, %v81_v10  ;;  %v156_v39 = vmul.f32 %v155_v31, %v151_v27 }
  0x38   :  { %v89_v22 = vrot.slane %v75_v18, %v81_v10  ;;  %v106_v33 = vrot.slane %v92_v21, %v81_v10  ;;  %v153_v45 = vmul.f32 %v152_v38, %v149_v26 }
  0x39   :  { %v90_v23 = vcombine.high %v82_v19, %v82_v19  ;;  %v118_v25 = vsel %vm117_vm0, %v82_v19, 0.0  ;;  %v107_v34 = vcombine.high %v99_v24, %v99_v24  ;;  %v125_v37 = vsel %vm117_vm0, %v99_v24, 0.0 }
  0x3a   :  { %v91_v28 = vcombine.high %v89_v22, %v89_v22  ;;  %v121_v30 = vsel %vm117_vm0, %v89_v22, 0.0  ;;  %v108_v41 = vcombine.high %v106_v33, %v106_v33  ;;  %v129_v44 = vsel %vm117_vm0, %v106_v33, 0.0 }
  0x3b   :  { %v119_v29 = vsel %vm117_vm0, %v90_v23, 0.0  ;;  %v127_v42 = vsel %vm117_vm0, %v107_v34, 0.0  ;;  %v157_v46 = vmul.f32 %v156_v39, %v151_v27 }
  0x3c   :  { %v120_v32 = vadd.f32 %v119_v29, %v118_v25  ;;  %v123_v35 = vsel %vm117_vm0, %v91_v28, 0.0  ;;  %v131_v48 = vsel %vm117_vm0, %v108_v41, 0.0 }
  0x3d   :  { %v158_v50 = vadd.f32 %v157_v46, %v153_v45 }
  0x3e   :  { %v122_v36 = vadd.f32 %v121_v30, %v120_v32 }
  0x3f   :  { %v160_v52 = vsel %vm159_vm1, %v158_v50, 0.0 }
  0x40   :  { %v124_v40 = vadd.f32 %v123_v35, %v122_v36 }
  0x42   :  { %v126_v43 = vadd.f32 %v125_v37, %v124_v40 }
  0x44   :  { %v128_v47 = vadd.f32 %v127_v42, %v126_v43 }
  0x46   :  { %v130_v49 = vadd.f32 %v129_v44, %v128_v47 }
  0x48   :  { %v132_v51 = vadd.f32 %v131_v48, %v130_v49 }
  0x4a   :  { %133 = vadd.xlane.f32.xlu0 %v132_v51 }
  0x4e   :  { %161 = vadd.xlane.f32.xlu0 %v160_v52 }
  0xd3   :  { %v134_v53 = vpop.xlane.xlu0 %133 }
  0xd4   :  { %v135_v54 = vrot.slane %v134_v53, 4 }
  0xd6   :  { %v136_v55 = vadd.f32 %v135_v54, %v134_v53 }
  0xd7   :  { %v162_v56 = vpop.xlane.xlu0 %161 }
  0xd8   :  { %v137_v57 = vrot.slane %v136_v55, 2  ;;  %v163_v58 = vrot.slane %v162_v56, 4 }
  0xda   :  { %v164_v59 = vadd.f32 %v163_v58, %v162_v56  ;;  %v138_v60 = vadd.f32 %v137_v57, %v136_v55 }
  0xdc   :  { %v165_v61 = vrot.slane %v164_v59, 2  ;;  %v139_v62 = vrot.slane %v138_v60, 1 }
  0xde   :  { %v166_v63 = vadd.f32 %v165_v61, %v164_v59  ;;  %v140_v0 = vadd.f32 %v139_v62, %v138_v60 }
  0xe0   :  { %200 = vpush %v140_v0  ;;  %v167_v1 = vrot.slane %v166_v63, 1 }
  0xe2   :  { %v168_v2 = vadd.f32 %v167_v1, %v166_v63 }
  0xe4   :  { %202 = vpush %v168_v2 }
 0x111   :  { %s201_s2 = spop %200 }
 0x112   :  { %s170_s3 = smul.f32 0.0005, %s201_s2 }
 0x115   :  { %s203_s7 = spop %202 }
 0x116   :  { %s171_s8 = sadd.f32 %s203_s7, %s170_s3 }
 0x118   :  { %173 = sst [smem:[#allocation10]] %s171_s8 }
 0x119   :  { %190 = dma.smem_to_hbm %s311_s9, 16, %s364_s4, [#allocation4]  }
 0x11a   :  { %304 = dma.done.wait [#allocation4], 16  }
 0x11b   :  { %305 = vsyncadd [#allocation4], 4294967280 }
 0x11c   :  { %194 = sfence }
 0x11d   :  { %195 = vsyncpa [#allocation3], 1 }
 0x11e   :  { %196 = vsyncpa [#allocation6], 1 }
 0x11f   :  { %197 = vsyncpa [#allocation9], 1 }
 0x120   :  { %198 = vsyncpa [#allocation4], 1 }

</bundles_post_ra>
